<compile_context>
chip_gen: v7x
topology: tpu7x:2x2x1
jax: 0.10.0
libtpu: 0.0.40
codegen_flags: <defaults>
</compile_context>

<pallas_src>
import functools

import jax
import jax.numpy as jnp
from jax.experimental import pallas as pl
from jax.experimental.pallas import tpu as pltpu

EPS_IN = 1e-5     # nn.InstanceNorm1d default eps (affine=False, no running stats)
EPS_LN = 1e-5     # nn.LayerNorm default eps
NEG_INF = -1e30   # finite stand-in for the -inf key-padding bias (kept in f32)


# ---------------------------------------------------------------------------
# Stage 1: InstanceNorm1d + padding hack + pos-enc + mask (runs once, full batch)
# ---------------------------------------------------------------------------
def _prep_kernel(x_ref, pe_ref, xp_ref, mrow_ref):
    x = x_ref[...]                                       # (b, k, d) f32
    b, k, d = x.shape

    # InstanceNorm1d on x.permute(0,2,1): per (batch, channel) stats over seq.
    mean = jnp.mean(x, axis=1, keepdims=True)
    var = jnp.mean((x - mean) ** 2, axis=1, keepdims=True)
    xn = (x - mean) * jax.lax.rsqrt(var + EPS_IN)

    # if sum(x == x[0, -1, 0]) >= d: x[x == x[0, -1, 0]] = 0   (batch-coupled!)
    v = xn[0:1, k - 1:k, 0:1]                            # (1, 1, 1)
    eq = xn == v
    cnt = jnp.sum(eq.astype(jnp.float32), keepdims=True)  # (1, 1, 1)
    xn = jnp.where(jnp.logical_and(cnt >= d, eq), 0.0, xn)

    # x_mask = (x[:, :, 0] == 0) ; x = x + pe[:, :k] ; x[x_mask, :] = 0
    mask = xn[:, :, 0:1] == 0.0                          # (b, k, 1)
    xp_ref[...] = jnp.where(mask, 0.0, xn + pe_ref[...])
    mrow_ref[...] = mask.astype(jnp.float32)             # 1.0 at padded rows


# ---------------------------------------------------------------------------
# Stage 2: the transformer encoder, layer-outer grid, weights streamed once/layer
# ---------------------------------------------------------------------------
def _encoder_kernel(xp_ref, mrow_ref, kbias_ref,
                    wq_ref, bq_ref, wk_ref, bk_ref, wv_ref, bv_ref,
                    wo_ref, bo_ref,
                    ln1w_ref, ln1b_ref, ln2w_ref, ln2b_ref,
                    w1_ref, b1_ref, w2_ref, b2_ref,
                    out_ref,
                    xs_ref,
                    *, n_heads):
    l = pl.program_id(0)                      # layer   (outer  -> weights DMA'd once/layer)
    bt = pl.program_id(1)                     # batch tile (inner)
    n_layers = pl.num_programs(0)

    bt_size, k, d = xp_ref.shape
    m_rows = bt_size * k                      # rows fed to the MXU per step
    d_head = d // n_heads
    scale = 1.0 / (d_head ** 0.5)

    # Load prepared activations into the persistent VMEM state at the first layer.
    @pl.when(l == 0)
    def _init():
        xs_ref[bt] = xp_ref[...].reshape(m_rows, d)

    # Per-layer weights (the only weights resident; next layer is being prefetched).
    wq = wq_ref[0]; wk = wk_ref[0]; wv = wv_ref[0]; wo = wo_ref[0]      # (d, d)  bf16
    w1 = w1_ref[0]; w2 = w2_ref[0]                                      # bf16
    bq = bq_ref[0]; bk = bk_ref[0]; bv = bv_ref[0]; bo = bo_ref[0]      # (1, d)  f32
    b1 = b1_ref[0]; b2 = b2_ref[0]
    ln1w = ln1w_ref[0]; ln1b = ln1b_ref[0]
    ln2w = ln2w_ref[0]; ln2b = ln2b_ref[0]

    def layer_norm(y, w, b_):
        mu = jnp.mean(y, axis=-1, keepdims=True)
        var = jnp.mean((y - mu) ** 2, axis=-1, keepdims=True)
        return (y - mu) * jax.lax.rsqrt(var + EPS_LN) * w + b_

    xb = xs_ref[bt]                           # (M, d) f32 running activation
    kb = kbias_ref[...]                       # (bt_size, 1, k) key-padding bias
    xb_bf = xb.astype(jnp.bfloat16)

    # ----- Q/K/V projections: batch rows folded into M (fills the MXU) -----
    qf = jnp.dot(xb_bf, wq, preferred_element_type=jnp.float32) + bq
    kf = jnp.dot(xb_bf, wk, preferred_element_type=jnp.float32) + bk
    vf = jnp.dot(xb_bf, wv, preferred_element_type=jnp.float32) + bv
    q3 = qf.astype(jnp.bfloat16).reshape(bt_size, k, d)
    k3 = kf.astype(jnp.bfloat16).reshape(bt_size, k, d)
    v3 = vf.astype(jnp.bfloat16).reshape(bt_size, k, d)

    # ----- attention: per-head scores batched over the batch tile; head contexts
    #       concatenated so the output projection is ONE full-d matmul -----
    # TODO(synk): head lane slices start at d_head (<128) offsets; padded/aligned
    #             per-head layouts would avoid mid-vreg relayouts at large d_model.
    ctx_parts = []
    for h in range(n_heads):
        sl = slice(h * d_head, (h + 1) * d_head)
        s = jax.lax.dot_general(q3[:, :, sl], k3[:, :, sl],
                                (((2,), (2,)), ((0,), (0,))),
                                preferred_element_type=jnp.float32)     # (bt, k, k)
        s = s * scale + kb                                              # mask padded keys
        s = s - jnp.max(s, axis=-1, keepdims=True)
        e = jnp.exp(s)
        p = e / jnp.sum(e, axis=-1, keepdims=True)
        ctx = jax.lax.dot_general(p.astype(jnp.bfloat16), v3[:, :, sl],
                                  (((2,), (1,)), ((0,), (0,))),
                                  preferred_element_type=jnp.float32)   # (bt, k, dh)
        ctx_parts.append(ctx)
    ctx_full = jnp.concatenate(ctx_parts, axis=-1).reshape(m_rows, d)   # (M, d) f32
    attn = jnp.dot(ctx_full.astype(jnp.bfloat16), wo,
                   preferred_element_type=jnp.float32) + bo             # one full-d matmul
    # TODO(synk): dropout (p=0.1 in nn.TransformerEncoderLayer) is identity here
    #             (inference semantics).
    x1 = layer_norm(xb + attn, ln1w, ln1b)

    # ----- feed-forward (ReLU), batch rows folded into M -----
    hdn = jnp.maximum(
        jnp.dot(x1.astype(jnp.bfloat16), w1, preferred_element_type=jnp.float32) + b1,
        0.0)
    ffn = jnp.dot(hdn.astype(jnp.bfloat16), w2,
                  preferred_element_type=jnp.float32) + b2
    x2 = layer_norm(x1 + ffn, ln2w, ln2b)
    xs_ref[bt] = x2

    # ----- finalize: x[x_mask, :] = 0 after the encoder, write the output block -----
    # TODO(synk): when seq is a multiple of 128 the (b,d,k) transpose could be
    #             emitted here and the host-side swapaxes dropped.
    @pl.when(l == n_layers - 1)
    def _finish():
        mrow = mrow_ref[...].reshape(m_rows, 1)
        out_ref[...] = jnp.where(mrow > 0.5, 0.0, x2).reshape(bt_size, k, d)


# ---------------------------------------------------------------------------
# Host-side glue: parameters + the two pallas_calls
# ---------------------------------------------------------------------------
def make_params(key, d_model, n_layers, n_heads, dim_ff, max_len):
    ks = jax.random.split(key, 13)

    def rnd(k, shape, scale=0.05, dtype=jnp.float32):
        return (scale * jax.random.normal(k, shape)).astype(dtype)

    wdt = jnp.bfloat16   # matmul weights in bf16 (MXU-friendly; accum stays f32)
    return dict(
        pe=rnd(ks[0], (1, max_len, d_model)),                      # trainable pos-enc
        wq=rnd(ks[1], (n_layers, d_model, d_model), dtype=wdt),    # fused over heads
        bq=rnd(ks[2], (n_layers, 1, d_model)),
        wk=rnd(ks[3], (n_layers, d_model, d_model), dtype=wdt),
        bk=rnd(ks[4], (n_layers, 1, d_model)),
        wv=rnd(ks[5], (n_layers, d_model, d_model), dtype=wdt),
        bv=rnd(ks[6], (n_layers, 1, d_model)),
        wo=rnd(ks[7], (n_layers, d_model, d_model), dtype=wdt),
        bo=rnd(ks[8], (n_layers, 1, d_model)),
        ln1w=jnp.ones((n_layers, 1, d_model), jnp.float32),
        ln1b=jnp.zeros((n_layers, 1, d_model), jnp.float32),
        ln2w=jnp.ones((n_layers, 1, d_model), jnp.float32),
        ln2b=jnp.zeros((n_layers, 1, d_model), jnp.float32),
        w1=rnd(ks[9], (n_layers, d_model, dim_ff), dtype=wdt),
        b1=rnd(ks[10], (n_layers, 1, dim_ff)),
        w2=rnd(ks[11], (n_layers, dim_ff, d_model), dtype=wdt),
        b2=rnd(ks[12], (n_layers, 1, d_model)),
    )


def _pick_batch_tile(b, k, target_rows=512):
    """Largest divisor of b such that tile*seq stays <= target_rows (fills the MXU)."""
    best = 1
    for cand in range(1, b + 1):
        if b % cand == 0 and cand * k <= target_rows:
            best = cand
    return best


def transformer_forward(x, params, *, n_heads):
    b, k, d = x.shape
    n_layers = params["wq"].shape[0]
    pe = params["pe"][:, :k, :]                                    # glue: slice pe to seq len

    # ---- stage 1: once for the whole batch (batch-coupled padding hack) ----
    xp, mrow = pl.pallas_call(
        _prep_kernel,
        out_shape=(jax.ShapeDtypeStruct((b, k, d), jnp.float32),
                   jax.ShapeDtypeStruct((b, k, 1), jnp.float32)),
    )(x, pe)
    # glue: build the (b, 1, k) key-padding bias with one tiny batched transpose
    # (replaces the per-batch unrolled in-kernel transposes).
    kbias = jnp.swapaxes(mrow, 1, 2) * NEG_INF

    # ---- stage 2: encoder, layer-outer grid ----
    bt_size = _pick_batch_tile(b, k)
    n_bt = b // bt_size

    order = ["wq", "bq", "wk", "bk", "wv", "bv", "wo", "bo",
             "ln1w", "ln1b", "ln2w", "ln2b", "w1", "b1", "w2", "b2"]
    weights = [params[n] for n in order]

    def per_layer_spec(a):
        zeros = (0,) * (a.ndim - 1)
        # Depends only on l (outer axis) -> each layer's weights DMA'd once, kept
        # resident across all batch-tile steps of that layer.
        return pl.BlockSpec((1,) + a.shape[1:], lambda l, bt, _z=zeros: (l,) + _z)

    # Prepared input only needed at l==0; output only produced at l==n_layers-1.
    # Gating the block index avoids re-streaming activations at every layer.
    xp_spec = pl.BlockSpec((bt_size, k, d),
                           lambda l, bt: (jnp.where(l == 0, bt, 0), 0, 0))
    mrow_spec = pl.BlockSpec((bt_size, k, 1),
                             lambda l, bt: (jnp.where(l == n_layers - 1, bt, 0), 0, 0))
    kbias_spec = pl.BlockSpec((bt_size, 1, k), lambda l, bt: (bt, 0, 0))
    out_spec = pl.BlockSpec((bt_size, k, d),
                            lambda l, bt: (jnp.where(l == n_layers - 1, bt, 0), 0, 0))

    y = pl.pallas_call(
        functools.partial(_encoder_kernel, n_heads=n_heads),
        grid=(n_layers, n_bt),                                    # LAYER OUTER
        in_specs=[xp_spec, mrow_spec, kbias_spec] + [per_layer_spec(a) for a in weights],
        out_specs=out_spec,
        out_shape=jax.ShapeDtypeStruct((b, k, d), jnp.float32),
        scratch_shapes=[pltpu.VMEM((n_bt, bt_size * k, d), jnp.float32)],  # layer-carried state
        compiler_params=pltpu.CompilerParams(
            # Both axes "arbitrary": guarantees single-pass weight streaming and
            # avoids megacore scratch-coherence hazards on v7x. (On v7x one may
            # mark the batch-tile axis "parallel" to use both TCs at the cost of
            # 2x weight HBM traffic.)
            dimension_semantics=("arbitrary", "arbitrary"),
            # ~56 MiB is safe on v7x (64 MiB/TC); raise to ~100 MiB on v5e/v6e
            # for larger batch tiles / deeper weight buffering.
            vmem_limit_bytes=56 * 1024 * 1024),
    )(xp, mrow, kbias, *weights)

    # glue: final layout transpose, matches torch.transpose(x, 1, 2)
    return jnp.swapaxes(y, 1, 2)                                   # (b, d, k)


if __name__ == "__main__":
    # Small shapes consistent with the module's forward: x is (batch, seq, d_model)
    batch, seq_len, d_model = 2, 8, 32
    n_layers, n_heads, dim_ff, max_len = 2, 4, 64, 16

    root = jax.random.PRNGKey(0)
    kx, kp = jax.random.split(root)
    x = jax.random.normal(kx, (batch, seq_len, d_model), dtype=jnp.float32)
    params = make_params(kp, d_model, n_layers, n_heads, dim_ff, max_len)

    out = transformer_forward(x, params, n_heads=n_heads)
    out = jax.block_until_ready(out)

    assert out.shape == (batch, d_model, seq_len), out.shape
    assert bool(jnp.all(jnp.isfinite(out)))
    print("KERNEL_OK")
</pallas_src>

<mosaic_0001>
module attributes {stable_mosaic.version = 11 : i64} {
  func.func @_prep_kernel(%arg0: memref<2x8x32xf32, #tpu.memory_space<vmem>>, %arg1: memref<1x8x32xf32, #tpu.memory_space<vmem>>, %arg2: memref<2x8x32xf32, #tpu.memory_space<vmem>>, %arg3: memref<2x8x1xf32, #tpu.memory_space<vmem>>) attributes {dimension_semantics = [], scalar_prefetch = 0 : i64, scratch_operands = 0 : i64, tpu.core_type = #tpu.core_type<tc>} {
    %c0 = arith.constant 0 : index
    %c0_0 = arith.constant 0 : index
    %c0_1 = arith.constant 0 : index
    %0 = vector.load %arg0[%c0, %c0_0, %c0_1] : memref<2x8x32xf32, #tpu.memory_space<vmem>>, vector<2x8x32xf32>
    %cst = arith.constant dense<0.000000e+00> : vector<2x32xf32>
    %1 = vector.multi_reduction <add>, %0, %cst [1] : vector<2x8x32xf32> to vector<2x32xf32>
    %2 = vector.shape_cast %1 : vector<2x32xf32> to vector<2x1x32xf32>
    %cst_2 = arith.constant 8.000000e+00 : f32
    %3 = vector.broadcast %cst_2 : f32 to vector<2x1x32xf32>
    %4 = arith.divf %2, %3 : vector<2x1x32xf32>
    %5 = vector.broadcast %4 : vector<2x1x32xf32> to vector<2x8x32xf32>
    %6 = arith.subf %0, %5 : vector<2x8x32xf32>
    %7 = arith.mulf %6, %6 : vector<2x8x32xf32>
    %cst_3 = arith.constant dense<0.000000e+00> : vector<2x32xf32>
    %8 = vector.multi_reduction <add>, %7, %cst_3 [1] : vector<2x8x32xf32> to vector<2x32xf32>
    %9 = vector.shape_cast %8 : vector<2x32xf32> to vector<2x1x32xf32>
    %cst_4 = arith.constant 8.000000e+00 : f32
    %10 = vector.broadcast %cst_4 : f32 to vector<2x1x32xf32>
    %11 = arith.divf %9, %10 : vector<2x1x32xf32>
    %12 = vector.broadcast %4 : vector<2x1x32xf32> to vector<2x8x32xf32>
    %13 = arith.subf %0, %12 : vector<2x8x32xf32>
    %cst_5 = arith.constant 9.99999974E-6 : f32
    %14 = vector.broadcast %cst_5 : f32 to vector<2x1x32xf32>
    %15 = arith.addf %11, %14 : vector<2x1x32xf32>
    %16 = math.rsqrt %15 : vector<2x1x32xf32>
    %17 = vector.broadcast %16 : vector<2x1x32xf32> to vector<2x8x32xf32>
    %18 = arith.mulf %13, %17 : vector<2x8x32xf32>
    %19 = vector.extract_strided_slice %18 {offsets = [0, 7, 0], sizes = [1, 1, 1], strides = [1, 1, 1]} : vector<2x8x32xf32> to vector<1x1x1xf32>
    %20 = vector.broadcast %19 : vector<1x1x1xf32> to vector<2x8x32xf32>
    %21 = arith.cmpf oeq, %18, %20 : vector<2x8x32xf32>
    %22 = arith.extui %21 : vector<2x8x32xi1> to vector<2x8x32xi32>
    %23 = arith.sitofp %22 : vector<2x8x32xi32> to vector<2x8x32xf32>
    %24 = vector.shape_cast %23 : vector<2x8x32xf32> to vector<1x2x8x32xf32>
    %cst_6 = arith.constant dense<0.000000e+00> : vector<1xf32>
    %25 = vector.multi_reduction <add>, %24, %cst_6 [1, 2, 3] : vector<1x2x8x32xf32> to vector<1xf32>
    %26 = vector.shape_cast %25 : vector<1xf32> to vector<1x1x1x1xf32>
    %27 = vector.extract %26[0, 0, 0, 0] : f32 from vector<1x1x1x1xf32>
    %28 = vector.broadcast %27 : f32 to vector<1x1x1xf32>
    %cst_7 = arith.constant 3.200000e+01 : f32
    %29 = vector.broadcast %cst_7 : f32 to vector<1x1x1xf32>
    %30 = arith.cmpf oge, %28, %29 : vector<1x1x1xf32>
    %31 = vector.broadcast %30 : vector<1x1x1xi1> to vector<2x8x32xi1>
    %32 = arith.andi %31, %21 : vector<2x8x32xi1>
    %cst_8 = arith.constant 0.000000e+00 : f32
    %33 = vector.broadcast %cst_8 : f32 to vector<2x8x32xf32>
    %34 = arith.select %32, %33, %18 : vector<2x8x32xi1>, vector<2x8x32xf32>
    %35 = vector.extract_strided_slice %34 {offsets = [0, 0, 0], sizes = [2, 8, 1], strides = [1, 1, 1]} : vector<2x8x32xf32> to vector<2x8x1xf32>
    %cst_9 = arith.constant 0.000000e+00 : f32
    %36 = vector.broadcast %cst_9 : f32 to vector<2x8x1xf32>
    %37 = arith.cmpf oeq, %35, %36 : vector<2x8x1xf32>
    %c0_10 = arith.constant 0 : index
    %c0_11 = arith.constant 0 : index
    %c0_12 = arith.constant 0 : index
    %38 = vector.load %arg1[%c0_10, %c0_11, %c0_12] : memref<1x8x32xf32, #tpu.memory_space<vmem>>, vector<1x8x32xf32>
    %39 = vector.broadcast %38 : vector<1x8x32xf32> to vector<2x8x32xf32>
    %40 = arith.addf %34, %39 : vector<2x8x32xf32>
    %cst_13 = arith.constant 0.000000e+00 : f32
    %41 = vector.shape_cast %37 : vector<2x8x1xi1> to vector<2x8x1xi1>
    %42 = vector.broadcast %41 : vector<2x8x1xi1> to vector<2x8x32xi1>
    %43 = vector.broadcast %cst_13 : f32 to vector<2x8x32xf32>
    %44 = arith.select %42, %43, %40 : vector<2x8x32xi1>, vector<2x8x32xf32>
    %c0_14 = arith.constant 0 : index
    %c0_15 = arith.constant 0 : index
    %c0_16 = arith.constant 0 : index
    %45 = vector.load %arg2[%c0_14, %c0_15, %c0_16] : memref<2x8x32xf32, #tpu.memory_space<vmem>>, vector<2x8x32xf32>
    tpu.vector_store %arg2[%c0_14, %c0_15, %c0_16], %44 {strides = array<i32>} : memref<2x8x32xf32, #tpu.memory_space<vmem>>, vector<2x8x32xf32>,
    %46 = arith.extui %37 : vector<2x8x1xi1> to vector<2x8x1xi32>
    %47 = arith.sitofp %46 : vector<2x8x1xi32> to vector<2x8x1xf32>
    %c0_17 = arith.constant 0 : index
    %c0_18 = arith.constant 0 : index
    %c0_19 = arith.constant 0 : index
    %48 = vector.load %arg3[%c0_17, %c0_18, %c0_19] : memref<2x8x1xf32, #tpu.memory_space<vmem>>, vector<2x8x1xf32>
    tpu.vector_store %arg3[%c0_17, %c0_18, %c0_19], %47 {strides = array<i32>} : memref<2x8x1xf32, #tpu.memory_space<vmem>>, vector<2x8x1xf32>,
    return
  }
}

</mosaic_0001>

<bundles_post_ra>
// kernel: tpu_custom_call.1
= control target key start
LH: loop header
LB: loop body
LE: loop exit
PB: predicated region body
PF: predicated region fallthrough
CT: control target
= control target key end

     0   :  { %9 = vsyncpa [#allocation3], 0  ;;  %s355_s0 = inlined_call_operand.hbm [shape: f32[2,8,32], index: 0, kind: input, shape index: {}]   ;;  %s356_s1 = inlined_call_operand.hbm [shape: f32[1,8,32], index: 1, kind: input, shape index: {}]   ;;  %s357_s2 = inlined_call_operand.hbm [shape: f32[2,8,32], index: 2, kind: output, shape index: {0}]   ;;  %s358_s3 = inlined_call_operand.vmem [shape: f32[2,8,1], index: 3, kind: output, shape index: {1}]  }
   0x1   :  { %10 = vsyncpa [#allocation6], 0 }
   0x2   :  { %11 = vsyncpa [#allocation4], 0  ;;  %s256_s12 = smov [#allocation2]   ;;  %s184_s16 = scalar_lea.hbm %s355_s0, 256 }
   0x3   :  { %s17_s13 = sshll.u32 %s256_s12, 4  ;;  %p185_p0 = scmp.ne.s32.totalorder %s355_s0, %s184_s16  ;;  %s18_s13 = int_to_ptr.vmem [resolvable:$true] %s17_s13 }
   0x4   :  { %p188_p1 = scmp.lt.u32.totalorder %s184_s16, %s355_s0 }
   0x6   :  { %p190_p2 = pnand %p188_p1, %p185_p0 }
   0x8   :  { %193 = shalt.err (!%p190_p2)
}
   0x9   :  { %s194_s21 = scalar_lea.vmem %s18_s13, 256  ;;  %p199_p4 = scmp.lt.s32.totalorder %s18_s13, %s18_s13 }
   0xa   :  { %p195_p3 = scmp.ne.s32.totalorder %s18_s13, %s194_s21  ;;  %p200_p5 = scmp.lt.s32.totalorder %s194_s21, %s194_s21 }
   0xc   :  { %p201_p6 = por %p200_p5, %p199_p4 }
   0xe   :  { %p202_p7 = pnand %p201_p6, %p195_p3 }
  0x10   :  { %205 = shalt.err (!%p202_p7)
}
  0x11   :  { %s257_s22 = smov 128   ;;  %s258_s23 = smov 8  }
  0x12   :  { %23 = dma.hbm_to_vmem [thread:$0]  %s355_s0, 256, %s18_s13, [#allocation3], %s257_s22, %s257_s22, %s258_s23  }
  0x13   :  { %s259_s26 = smov [#allocation5]   ;;  %s206_s30 = scalar_lea.hbm %s356_s1, 128 }
  0x14   :  { %s30_s27 = sshll.u32 %s259_s26, 4  ;;  %p207_p8 = scmp.ne.s32.totalorder %s356_s1, %s206_s30  ;;  %s31_s27 = int_to_ptr.vmem [resolvable:$true] %s30_s27 }
  0x15   :  { %p210_p9 = scmp.lt.u32.totalorder %s206_s30, %s356_s1 }
  0x17   :  { %p212_p10 = pnand %p210_p9, %p207_p8 }
  0x19   :  { %215 = shalt.err (!%p212_p10)
}
  0x1a   :  { %s216_s8 = scalar_lea.vmem %s31_s27, 128  ;;  %p221_p12 = scmp.lt.s32.totalorder %s31_s27, %s31_s27 }
  0x1b   :  { %p217_p11 = scmp.ne.s32.totalorder %s31_s27, %s216_s8  ;;  %p222_p13 = scmp.lt.s32.totalorder %s216_s8, %s216_s8 }
  0x1d   :  { %p223_p0 = por %p222_p13, %p221_p12 }
  0x1f   :  { %p224_p1 = pnand %p223_p0, %p217_p11 }
  0x21   :  { %227 = shalt.err (!%p224_p1)
}
  0x22   :  { %33 = dma.hbm_to_vmem [thread:$0]  %s356_s1, 128, %s31_s27, [#allocation6]  }
  0x23   :  { %250 = dma.done.wait [#allocation3], 256  }
  0x24   :  { %251 = vsyncadd [#allocation3], 4294967040 }
  0x25   :  { %252 = dma.done.wait [#allocation6], 128  }
  0x26   :  { %253 = vsyncadd [#allocation6], 4294967168  ;;  %vm42_vm0 = vcmask 261120   ;;  %v40_v0 = vld [vmem:[#allocation2] sm:$0xff]  ;;  %v41_v6 = vld [vmem:[#allocation2 + $0x8] sm:$0xff]  ;;  %v260_v48 = vmov 0.0  }
  0x27   :  { %v43_v1 = vsel %vm42_vm0, %v40_v0, 0.0  ;;  %v50_v9 = vsel %vm42_vm0, %v41_v6, 0.0  ;;  %v261_v54 = vmov 0   ;;  %vm138_vm6 = vcmask 7168   ;;  %s262_s15 = smov [#allocation7]  }
  0x28   :  { %v44_v2 = vrot.slane %v43_v1, 4  ;;  %v51_v11 = vrot.slane %v50_v9, 4  ;;  %179 = vset.pattern.permute.xlu1 %v261_v54  ;;  %178 = vset.pattern.permute.xlu0 %v261_v54  ;;  %s146_s16 = sshll.u32 %s262_s15, 4  ;;  %s147_s16 = int_to_ptr.vmem [resolvable:$true] %s146_s16 }
  0x29   :  { %s228_s17 = scalar_lea.vmem %s147_s16, 256  ;;  %p233_p3 = scmp.lt.s32.totalorder %s147_s16, %s147_s16 }
  0x2a   :  { %v45_v3 = vadd.f32 %v44_v2, %v43_v1  ;;  %v52_v14 = vadd.f32 %v51_v11, %v50_v9  ;;  %p229_p2 = scmp.ne.s32.totalorder %s147_s16, %s228_s17  ;;  %p234_p4 = scmp.lt.s32.totalorder %s228_s17, %s228_s17 }
  0x2c   :  { %v46_v4 = vrot.slane %v45_v3, 2  ;;  %v53_v18 = vrot.slane %v52_v14, 2  ;;  %p235_p5 = por %p234_p4, %p233_p3 }
  0x2e   :  { %v47_v5 = vadd.f32 %v46_v4, %v45_v3  ;;  %v54_v21 = vadd.f32 %v53_v18, %v52_v14  ;;  %p236_p6 = pnand %p235_p5, %p229_p2 }
  0x30   :  { %v48_v7 = vrot.slane %v47_v5, 1  ;;  %v55_v24 = vrot.slane %v54_v21, 1 }
  0x32   :  { %v49_v8 = vadd.f32 %v48_v7, %v47_v5  ;;  %v56_v27 = vadd.f32 %v55_v24, %v54_v21  ;;  %v119_v5 = vld [vmem:[#allocation5] sm:$0xff] }
  0x34   :  { %v58_v10 = vmul.f32 0.125, %v49_v8  ;;  %v59_v28 = vmul.f32 0.125, %v56_v27 }
  0x36   :  { %v60_v12 = vsub.f32 %v40_v0, %v58_v10  ;;  %v61_v29 = vsub.f32 %v41_v6, %v59_v28 }
  0x38   :  { %v62_v13 = vmul.f32 %v60_v12, %v60_v12  ;;  %v63_v31 = vmul.f32 %v61_v29, %v61_v29 }
  0x3a   :  { %v64_v15 = vsel %vm42_vm0, %v62_v13, 0.0  ;;  %v71_v34 = vsel %vm42_vm0, %v63_v31, 0.0 }
  0x3b   :  { %v65_v16 = vrot.slane %v64_v15, 4  ;;  %v72_v35 = vrot.slane %v71_v34, 4 }
  0x3d   :  { %v66_v17 = vadd.f32 %v65_v16, %v64_v15  ;;  %v73_v36 = vadd.f32 %v72_v35, %v71_v34 }
  0x3f   :  { %v67_v19 = vrot.slane %v66_v17, 2  ;;  %v74_v37 = vrot.slane %v73_v36, 2 }
  0x41   :  { %v68_v20 = vadd.f32 %v67_v19, %v66_v17  ;;  %v75_v38 = vadd.f32 %v74_v37, %v73_v36 }
  0x43   :  { %v69_v22 = vrot.slane %v68_v20, 1  ;;  %v76_v39 = vrot.slane %v75_v38, 1 }
  0x45   :  { %v70_v23 = vadd.f32 %v69_v22, %v68_v20  ;;  %v77_v40 = vadd.f32 %v76_v39, %v75_v38 }
  0x47   :  { %v78_v25 = vmul.f32 0.125, %v70_v23  ;;  %v79_v41 = vmul.f32 0.125, %v77_v40 }
  0x49   :  { %v80_v26 = vadd.f32 1e-05, %v78_v25  ;;  %v81_v42 = vadd.f32 1e-05, %v79_v41 }
  0x4b   :  { %180 = vrsqrt.f32 %v80_v26 }
  0x4c   :  { %182 = vrsqrt.f32 %v81_v42 }
  0x55   :  { %v181_v30 = vpop.eup %180 }
  0x56   :  { %v84_v32 = vmul.f32 %v181_v30, %v60_v12  ;;  %v183_v43 = vpop.eup %182 }
  0x57   :  { %v85_v44 = vmul.f32 %v183_v43, %v61_v29 }
  0x58   :  { %v87_v33 = vrot.slane %v84_v32, 7 }
  0x5a   :  { %167 = vpush %v87_v33 }
  0x8b   :  { %s168_s1 = spop %167 }
  0x8c   :  { %v89_v45 = vstv %s168_s1 }
  0x8d   :  { %vm314_vm1 = vcmp.eq.f32.partialorder %v84_v32, %v89_v45  ;;  %vm318_vm2 = vcmp.eq.f32.partialorder %v85_v44, %v89_v45 }
  0x8e   :  { %v163_v49 = vsel %vm314_vm1, 1.0, %v260_v48  ;;  %v164_v50 = vsel %vm318_vm2, 1.0, %v260_v48 }
  0x8f   :  { %v97_v51 = vsel %vm42_vm0, %v163_v49, 0.0  ;;  %v98_v52 = vsel %vm42_vm0, %v164_v50, 0.0 }
  0x90   :  { %v99_v53 = vadd.f32 %v98_v52, %v97_v51 }
  0x92   :  { %100 = vadd.xlane.f32.xlu0 %v99_v53 }
 0x11f   :  { %v101_v55 = vpop.xlane.xlu0 %100 }
 0x120   :  { %v102_v56 = vrot.slane %v101_v55, 4 }
 0x122   :  { %v103_v57 = vadd.f32 %v102_v56, %v101_v55 }
 0x124   :  { %v104_v58 = vrot.slane %v103_v57, 2 }
 0x126   :  { %v105_v59 = vadd.f32 %v104_v58, %v103_v57 }
 0x128   :  { %v106_v60 = vrot.slane %v105_v59, 1 }
 0x12a   :  { %v107_v61 = vadd.f32 %v106_v60, %v105_v59 }
 0x12c   :  { %169 = vpush %v107_v61 }
 0x15d   :  { %s170_s10 = spop %169 }
 0x15e   :  { %v109_v62 = vstv %s170_s10 }
 0x15f   :  { %vm110_vm3 = vcmp.ge.f32.partialorder %v109_v62, 32.0 }
 0x160   :  { %vm113_vm4 = vmand %vm110_vm3, %vm314_vm1 }
 0x161   :  { %vm114_vm5 = vmand %vm110_vm3, %vm318_vm2  ;;  %v115_v63 = vsel %vm113_vm4, 0.0, %v84_v32 }
 0x162   :  { %v116_v0 = vsel %vm114_vm5, 0.0, %v85_v44  ;;  %vm117_vm7 = vcmp.eq.f32.partialorder %v115_v63, 0.0  ;;  %v120_v6 = vadd.f32 %v119_v5, %v115_v63 }
 0x163   :  { %vm118_vm8 = vcmp.eq.f32.partialorder %v116_v0, 0.0  ;;  %v122_v1 = vsel %vm117_vm7, 1, %v261_v54  ;;  %v165_v2 = vsel %vm117_vm7, 1.0, %v260_v48  ;;  %v121_v8 = vadd.f32 %v119_v5, %v116_v0 }
 0x164   :  { %v123_v3 = vsel %vm118_vm8, 1, %v261_v54  ;;  %v166_v4 = vsel %vm118_vm8, 1.0, %v260_v48  ;;  %139 = vst.msk [vmem:[%s358_s3] sm:$0xff] %vm138_vm6, %v165_v2  ;;  %125 = vperm.xlu0 %178, %v122_v1  }
 0x165   :  { %140 = vst.msk [vmem:[%s358_s3 + $0x8] sm:$0xff] %vm138_vm6, %v166_v4  ;;  %128 = vperm.xlu1 %179, %v123_v3  }
 0x1e3   :  { %v126_v7 = vpop.permute.xlu0 %125 }
 0x1e4   :  { %v129_v9 = vpop.permute.xlu1 %128  ;;  %vm130_vm9 = vcmp.eq.s32.totalorder %v126_v7, 1 }
 0x1e5   :  { %vm131_vm10 = vcmp.eq.s32.totalorder %v129_v9, 1  ;;  %v132_v10 = vsel %vm130_vm9, 0.0, %v120_v6 }
 0x1e6   :  { %v133_v11 = vsel %vm131_vm10, 0.0, %v121_v8  ;;  %134 = vst.msk [vmem:[#allocation7] sm:$0xff] %vm42_vm0, %v132_v10 }
 0x1e7   :  { %135 = vst.msk [vmem:[#allocation7 + $0x8] sm:$0xff] %vm42_vm0, %v133_v11 }
 0x1e8   :  { %239 = shalt.err (!%p236_p6)
}
 0x1e9   :  { %s240_s19 = scalar_lea.hbm %s357_s2, 256 }
 0x1ea   :  { %p241_p7 = scmp.ne.s32.totalorder %s357_s2, %s240_s19  ;;  %p244_p8 = scmp.lt.u32.totalorder %s240_s19, %s357_s2 }
 0x1ec   :  { %p246_p9 = pnand %p244_p8, %p241_p7 }
 0x1ee   :  { %249 = shalt.err (!%p246_p9)
}
 0x1ef   :  { %152 = dma.vmem_to_hbm [thread:$0]  %s147_s16, 256, %s357_s2, [#allocation4], %s257_s22, %s257_s22, %s258_s23  }
 0x1f0   :  { %254 = dma.done.wait [#allocation4], 256  }
 0x1f1   :  { %255 = vsyncadd [#allocation4], 4294967040 }
 0x1f2   :  { %160 = vsyncpa [#allocation3], 1 }
 0x1f3   :  { %161 = vsyncpa [#allocation6], 1 }
 0x1f4   :  { %162 = vsyncpa [#allocation4], 1 }

</bundles_post_ra>
